<compile_context>
chip_gen: v7x
topology: tpu7x:2x2x1
jax: 0.10.0
libtpu: 0.0.40
codegen_flags: <defaults>
</compile_context>

<pallas_src>
import functools

import jax
import jax.numpy as jnp
from jax import lax
from jax.experimental import pallas as pl
from jax.experimental.pallas import tpu as pltpu

# Conservative K-tile cap: fits v5e's 16 MiB scoped-VMEM default with double
# buffering even for M=512 f32 features, while keeping per-step DMA large.
_MAX_TILE_K = 1024


def _gram_kernel(feat_ref, g_ref, *, inv_n):
    """Accumulate G = F @ F.T over K tiles; scale once in the final step."""
    k = pl.program_id(0)

    @pl.when(k == 0)
    def _():
        g_ref[...] = jnp.zeros_like(g_ref)

    f = feat_ref[...]
    # Contract the K axis of both operands directly (no transpose).
    g_ref[...] += lax.dot_general(
        f, f,
        dimension_numbers=(((1,), (1,)), ((), ())),
        preferred_element_type=jnp.float32,
    )

    @pl.when(k == pl.num_programs(0) - 1)
    def _():
        g_ref[...] = g_ref[...] * inv_n


def _style_loss_kernel(feat_ref, tgt_ref, loss_ref, acc_ref, *, inv_n, inv_mm):
    """Gram accumulation in VMEM scratch; MSE vs. target emitted as a scalar."""
    k = pl.program_id(0)

    @pl.when(k == 0)
    def _():
        acc_ref[...] = jnp.zeros_like(acc_ref)

    f = feat_ref[...]
    acc_ref[...] += lax.dot_general(
        f, f,
        dimension_numbers=(((1,), (1,)), ((), ())),
        preferred_element_type=jnp.float32,
    )

    @pl.when(k == pl.num_programs(0) - 1)
    def _():
        g = acc_ref[...] * inv_n
        diff = g - tgt_ref[...].astype(jnp.float32)
        loss_ref[0] = jnp.sum(diff * diff) * inv_mm


def _flatten(x):
    a, b, c, d = x.shape
    return x.reshape(a * b, c * d)


def _pad_and_pick_tile(features, max_tile_k):
    """Zero-pad K to a multiple of 128 (zeros don't change F @ F.T) and pick a
    K-tile that divides the padded K."""
    m, k = features.shape
    kp = max(128, ((k + 127) // 128) * 128)
    if kp != k:
        features = jnp.pad(features, ((0, 0), (0, kp - k)))
    tile_k = min(kp, max(128, (max_tile_k // 128) * 128))
    while kp % tile_k != 0:
        tile_k -= 128
    return features, tile_k


def gram_matrix_pallas(x, *, max_tile_k=_MAX_TILE_K):
    """G = (F @ F.T) / (a*b*c*d) for NCHW x, as a K-tiled Pallas reduction."""
    a, b, c, d = x.shape
    m = a * b
    n_total = a * b * c * d
    feats, tile_k = _pad_and_pick_tile(_flatten(x), max_tile_k)
    kp = feats.shape[1]
    kernel = functools.partial(_gram_kernel, inv_n=1.0 / float(n_total))
    return pl.pallas_call(
        kernel,
        out_shape=jax.ShapeDtypeStruct((m, m), jnp.float32),
        grid=(kp // tile_k,),
        in_specs=[pl.BlockSpec((m, tile_k), lambda k: (0, k))],
        out_specs=pl.BlockSpec((m, m), lambda k: (0, 0)),
        compiler_params=pltpu.CompilerParams(
            dimension_semantics=("arbitrary",)),
        cost_estimate=pl.CostEstimate(
            flops=2 * m * m * kp,
            bytes_accessed=m * kp * feats.dtype.itemsize + m * m * 4,
            transcendentals=0),
    )(feats)


def style_loss_pallas(x, target_gram, *, max_tile_k=_MAX_TILE_K):
    """mse_loss(gram_matrix(x), target_gram) without materializing G in HBM."""
    a, b, c, d = x.shape
    m = a * b
    n_total = a * b * c * d
    feats, tile_k = _pad_and_pick_tile(_flatten(x), max_tile_k)
    kp = feats.shape[1]
    kernel = functools.partial(
        _style_loss_kernel,
        inv_n=1.0 / float(n_total),
        inv_mm=1.0 / float(m * m),
    )
    loss = pl.pallas_call(
        kernel,
        out_shape=jax.ShapeDtypeStruct((1,), jnp.float32),
        grid=(kp // tile_k,),
        in_specs=[
            pl.BlockSpec((m, tile_k), lambda k: (0, k)),   # features: K-tiled
            pl.BlockSpec((m, m), lambda k: (0, 0)),        # target: resident
        ],
        out_specs=pl.BlockSpec(memory_space=pltpu.MemorySpace.SMEM),
        scratch_shapes=[pltpu.VMEM((m, m), jnp.float32)],
        compiler_params=pltpu.CompilerParams(
            dimension_semantics=("arbitrary",)),
        cost_estimate=pl.CostEstimate(
            flops=2 * m * m * kp,
            bytes_accessed=m * kp * feats.dtype.itemsize + m * m * 4 + 4,
            transcendentals=0),
    )(feats, target_gram)
    return loss[0]


class StyleLoss:
    """JAX/Pallas port of the PyTorch StyleLoss module."""

    def __init__(self, target_feature):
        self.target = lax.stop_gradient(gram_matrix_pallas(target_feature))
        self.loss = None

    def __call__(self, x):
        self.loss = style_loss_pallas(x, self.target)
        return x  # forward is a transparent layer: returns the input unchanged


def _gram_ref(x):
    a, b, c, d = x.shape
    f = x.reshape(a * b, c * d).astype(jnp.float32)
    return (f @ f.T) / (a * b * c * d)


if __name__ == "__main__":
    key = jax.random.PRNGKey(0)
    k_tgt, k_in = jax.random.split(key)

    # Small NCHW feature maps consistent with the module.
    a, b, c, d = 2, 4, 16, 16
    target_feature = jax.random.normal(k_tgt, (a, b, c, d), dtype=jnp.float32)
    x = jax.random.normal(k_in, (a, b, c, d), dtype=jnp.float32)

    module = StyleLoss(target_feature)
    out = jax.block_until_ready(module(x))
    loss = jax.block_until_ready(module.loss)

    # Pure-JAX reference.
    g_ref = _gram_ref(x)
    t_ref = _gram_ref(target_feature)
    loss_ref = jnp.mean((g_ref - t_ref) ** 2)

    assert out.shape == x.shape and jnp.allclose(out, x), "forward must return input"
    assert jnp.allclose(loss, loss_ref, rtol=1e-5, atol=1e-6), (
        f"loss mismatch: {loss} vs {loss_ref}"
    )

    # Loose sanity-check of the gram-only kernel against the XLA reference.
    g_pallas = jax.block_until_ready(gram_matrix_pallas(x))
    assert jnp.allclose(g_pallas, g_ref, rtol=5e-3, atol=1e-4), "gram mismatch"

    # Exercise the multi-step (pipelined) K reduction path and check it is
    # consistent with the single-step result.
    g_tiled = jax.block_until_ready(gram_matrix_pallas(x, max_tile_k=128))
    loss_tiled = jax.block_until_ready(
        style_loss_pallas(x, module.target, max_tile_k=128))
    assert jnp.allclose(g_tiled, g_pallas, rtol=1e-5, atol=1e-6), "tiled gram mismatch"
    assert jnp.allclose(loss_tiled, loss, rtol=1e-5, atol=1e-6), "tiled loss mismatch"

    print("KERNEL_OK")
</pallas_src>

<mosaic_0001>
module attributes {stable_mosaic.version = 11 : i64} {
  func.func @_gram_kernel(%arg0: i32, %arg1: memref<8x256xf32, #tpu.memory_space<vmem>>, %arg2: memref<8x8xf32, #tpu.memory_space<vmem>>) attributes {dimension_semantics = [#tpu.dimension_semantics<arbitrary>], iteration_bounds = array<i64: 1>, scalar_prefetch = 0 : i64, scratch_operands = 0 : i64, tpu.core_type = #tpu.core_type<tc>, window_params = [{transform_indices = @transform_0, window_bounds = array<i64: 8, 256>}, {pipeline_mode = #tpu.pipeline_mode<synchronous>, transform_indices = @transform_1, window_bounds = array<i64: 8, 8>}]} {
    %c0_i32 = arith.constant 0 : i32
    %0 = arith.cmpi eq, %arg0, %c0_i32 : i32
    %1 = arith.extui %0 : i1 to i32
    %c0_i32_0 = arith.constant 0 : i32
    %2 = arith.cmpi ne, %1, %c0_i32_0 : i32
    scf.if %2 {
      %cst_8 = arith.constant 0.000000e+00 : f32
      %11 = vector.broadcast %cst_8 : f32 to vector<8x8xf32>
      %c0_9 = arith.constant 0 : index
      %c0_10 = arith.constant 0 : index
      %12 = vector.load %arg2[%c0_9, %c0_10] : memref<8x8xf32, #tpu.memory_space<vmem>>, vector<8x8xf32>
      tpu.vector_store %arg2[%c0_9, %c0_10], %11 {strides = array<i32>} : memref<8x8xf32, #tpu.memory_space<vmem>>, vector<8x8xf32>,
    } else {
    }
    %c0 = arith.constant 0 : index
    %c0_1 = arith.constant 0 : index
    %3 = vector.load %arg1[%c0, %c0_1] : memref<8x256xf32, #tpu.memory_space<vmem>>, vector<8x256xf32>
    %c0_2 = arith.constant 0 : index
    %c0_3 = arith.constant 0 : index
    %4 = vector.load %arg2[%c0_2, %c0_3] : memref<8x8xf32, #tpu.memory_space<vmem>>, vector<8x8xf32>
    %cst = arith.constant dense<0.000000e+00> : vector<8x8xf32>
    %5 = tpu.matmul %3, %3, %cst {dimension_numbers = #tpu.dot_dimension_numbers<[1], [1], [0], [0], [0, 0, 1, 0], [], []>} : vector<8x256xf32>, vector<8x256xf32>, vector<8x8xf32> -> vector<8x8xf32>
    %6 = arith.addf %4, %5 : vector<8x8xf32>
    %c0_4 = arith.constant 0 : index
    %c0_5 = arith.constant 0 : index
    %7 = vector.load %arg2[%c0_4, %c0_5] : memref<8x8xf32, #tpu.memory_space<vmem>>, vector<8x8xf32>
    tpu.vector_store %arg2[%c0_4, %c0_5], %6 {strides = array<i32>} : memref<8x8xf32, #tpu.memory_space<vmem>>, vector<8x8xf32>,
    %c0_i32_6 = arith.constant 0 : i32
    %8 = arith.cmpi eq, %arg0, %c0_i32_6 : i32
    %9 = arith.extui %8 : i1 to i32
    %c0_i32_7 = arith.constant 0 : i32
    %10 = arith.cmpi ne, %9, %c0_i32_7 : i32
    scf.if %10 {
      %c0_8 = arith.constant 0 : index
      %c0_9 = arith.constant 0 : index
      %11 = vector.load %arg2[%c0_8, %c0_9] : memref<8x8xf32, #tpu.memory_space<vmem>>, vector<8x8xf32>
      %cst_10 = arith.constant 4.8828125E-4 : f32
      %12 = vector.broadcast %cst_10 : f32 to vector<8x8xf32>
      %13 = arith.mulf %11, %12 : vector<8x8xf32>
      %c0_11 = arith.constant 0 : index
      %c0_12 = arith.constant 0 : index
      %14 = vector.load %arg2[%c0_11, %c0_12] : memref<8x8xf32, #tpu.memory_space<vmem>>, vector<8x8xf32>
      tpu.vector_store %arg2[%c0_11, %c0_12], %13 {strides = array<i32>} : memref<8x8xf32, #tpu.memory_space<vmem>>, vector<8x8xf32>,
    } else {
    }
    return
  }
  func.func @transform_0(%arg0: i32) -> (i32, i32) {
    %c0_i32 = arith.constant 0 : i32
    %c0_i32_0 = arith.constant 0 : i32
    return %c0_i32, %arg0 : i32, i32
  }
  func.func @transform_1(%arg0: i32) -> (i32, i32) {
    %c0_i32 = arith.constant 0 : i32
    %c0_i32_0 = arith.constant 0 : i32
    %c0_i32_1 = arith.constant 0 : i32
    return %c0_i32, %c0_i32_0 : i32, i32
  }
}

</mosaic_0001>

<bundles_post_ra>
// kernel: tpu_custom_call.1
= control target key start
LH: loop header
LB: loop body
LE: loop exit
PB: predicated region body
PF: predicated region fallthrough
CT: control target
= control target key end

     0   :  { %6 = vsyncpa [#allocation3], 0  ;;  %s215_s0 = inlined_call_operand.hbm [shape: f32[8,256], index: 0, kind: input, shape index: {}]   ;;  %s216_s1 = inlined_call_operand.hbm [shape: f32[8,8], index: 1, kind: output, shape index: {}]  }
   0x1   :  { %7 = vsyncpa [#allocation4], 0  ;;  %s175_s6 = smov [#allocation2]   ;;  %s127_s10 = scalar_lea.hbm %s215_s0, 256 }
   0x2   :  { %s14_s7 = sshll.u32 %s175_s6, 4  ;;  %p128_p0 = scmp.ne.s32.totalorder %s215_s0, %s127_s10  ;;  %s15_s7 = int_to_ptr.vmem [resolvable:$true] %s14_s7 }
   0x3   :  { %p131_p1 = scmp.lt.u32.totalorder %s127_s10, %s215_s0 }
   0x5   :  { %p133_p2 = pnand %p131_p1, %p128_p0 }
   0x7   :  { %136 = shalt.err (!%p133_p2)
}
   0x8   :  { %s137_s15 = scalar_lea.vmem %s15_s7, 256  ;;  %p142_p4 = scmp.lt.s32.totalorder %s15_s7, %s15_s7 }
   0x9   :  { %p138_p3 = scmp.ne.s32.totalorder %s15_s7, %s137_s15  ;;  %p143_p5 = scmp.lt.s32.totalorder %s137_s15, %s137_s15 }
   0xb   :  { %p144_p6 = por %p143_p5, %p142_p4 }
   0xd   :  { %p145_p7 = pnand %p144_p6, %p138_p3 }
   0xf   :  { %148 = shalt.err (!%p145_p7)
}
  0x10   :  { %17 = dma.hbm_to_vmem [thread:$0]  %s215_s0, 256, %s15_s7, [#allocation3]  }
  0x11   :  { %171 = dma.done.wait [#allocation3], 256  }
  0x12   :  { %172 = vsyncadd [#allocation3], 4294967040  ;;  %vm25_vm0 = vcmask 64512   ;;  %v176_v0 = vmov 0.0   ;;  %v28_v1 = vld [vmem:[#allocation2 + $0x8] sm:$0xff]  ;;  %v27_v2 = vld [vmem:[#allocation2] sm:$0xff] }
  0x13   :  { %26 = vst.msk [vmem:[#allocation5] sm:$0xff] %vm25_vm0, %v176_v0  ;;  %30 = vmatprep.subr.mxu0 %v28_v1  ;;  %94 = vmatprep.mubr.f32.mxu0 %v28_v1  ;;  %s177_s18 = smov [#allocation5]  }
  0x14   :  { %31 = vmatpush1.xpose.msra.mxu0 %v27_v2  ;;  %s115_s0 = sshll.u32 %s177_s18, 4  ;;  %s116_s0 = int_to_ptr.vmem [resolvable:$true] %s115_s0 }
  0x15   :  { %s149_s19 = scalar_lea.vmem %s116_s0, 128  ;;  %p154_p9 = scmp.lt.s32.totalorder %s116_s0, %s116_s0 }
  0x16   :  { %p150_p8 = scmp.ne.s32.totalorder %s116_s0, %s149_s19  ;;  %p155_p10 = scmp.lt.s32.totalorder %s149_s19, %s149_s19 }
  0x17   :  { %95 = vmatmul.mubr.f32.vlgmr.msra.gmra.mrb[0].mxu0 %v27_v2 }
  0x18   :  { %p156_p11 = por %p155_p10, %p154_p9 }
  0x1a   :  { %v29_v3 = vld [vmem:[#allocation5] sm:$0xff]  ;;  %p157_p12 = pnand %p156_p11, %p150_p8 }
  0xea   :  { %v96_v4 = vpop.f32.mrb[0].mxu0 }
  0xeb   :  { %v100_v5 = vadd.f32 %v96_v4, %v29_v3  ;;  %v98_v6 = vpop.f32.mrb[1].mxu0 }
  0xed   :  { %102 = vst.msk [vmem:[#allocation5] sm:$0xff] %vm25_vm0, %v100_v5 }
  0xf4   :  { %v106_v7 = vld [vmem:[#allocation5] sm:$0xff] }
  0xf5   :  { %v107_v8 = vmul.f32 0.00048828125, %v106_v7 }
  0xf7   :  { %108 = vst.msk [vmem:[#allocation5] sm:$0xff] %vm25_vm0, %v107_v8 }
  0xf8   :  { %160 = shalt.err (!%p157_p12)
}
  0xf9   :  { %s161_s22 = scalar_lea.hbm %s216_s1, 128 }
  0xfa   :  { %p162_p13 = scmp.ne.s32.totalorder %s216_s1, %s161_s22  ;;  %p165_p0 = scmp.lt.u32.totalorder %s161_s22, %s216_s1 }
  0xfc   :  { %p167_p1 = pnand %p165_p0, %p162_p13 }
  0xfe   :  { %170 = shalt.err (!%p167_p1)
}
  0xff   :  { %118 = dma.vmem_to_hbm [thread:$0]  %s116_s0, 128, %s216_s1, [#allocation4]  }
 0x100   :  { %173 = dma.done.wait [#allocation4], 128  }
 0x101   :  { %174 = vsyncadd [#allocation4], 4294967168 }
 0x102   :  { %122 = vsyncpa [#allocation3], 1 }
 0x103   :  { %123 = vsyncpa [#allocation4], 1 }

</bundles_post_ra>
